<compile_context>
chip_gen: v7x
topology: tpu7x:2x2x1
jax: 0.10.0
libtpu: 0.0.40
codegen_flags: <defaults>
</compile_context>

<pallas_src>
import functools

import jax
import jax.numpy as jnp
from jax.experimental import pallas as pl
from jax.experimental.pallas import tpu as pltpu


def _round_up(n, m):
    return ((n + m - 1) // m) * m


def _choose_tiling(batch, desired_tile):
    """Pick (tile_b, n_tiles, padded_batch) for the batch grid axis."""
    # ~6 KB/row of f32 intermediates -> cap at 2048 rows so the tile also fits
    # v7x's 64 MiB physical VMEM with the default 32 MiB scoped limit.
    desired_tile = max(8, min(int(desired_tile), 2048))
    n_tiles = max(1, -(-batch // desired_tile))
    # v7x megacore: prefer an even tile count >= 2 once there is enough work so
    # the "parallel" grid axis splits across both TensorCores.
    if batch >= 512 and n_tiles % 2 == 1:
        n_tiles += 1
    tile_b = _round_up(max(1, -(-batch // n_tiles)), 8)
    b_pad = tile_b * n_tiles
    return tile_b, n_tiles, b_pad


def _beta_mlp_kernel(x_ref, w1_ref, b1_ref, w2_ref, b2_ref,
                     w3_ref, b3_ref, w4_ref, b4_ref, y_ref):
    """Fused 4-layer MLP: (Linear + ReLU) x 4.  One grid step = one batch tile."""
    x = x_ref[...].astype(jnp.bfloat16)                     # (TILE_B, state_dim)
    h1 = jnp.maximum(
        jnp.dot(x, w1_ref[...], preferred_element_type=jnp.float32)
        + b1_ref[...], 0.0)
    h2 = jnp.maximum(
        jnp.dot(h1.astype(jnp.bfloat16), w2_ref[...],
                preferred_element_type=jnp.float32) + b2_ref[...], 0.0)
    h3 = jnp.maximum(
        jnp.dot(h2.astype(jnp.bfloat16), w3_ref[...],
                preferred_element_type=jnp.float32) + b3_ref[...], 0.0)
    # Final layer 256 -> 1: transpose-free matmul; b4 is an SMEM scalar.
    y = jnp.dot(h3.astype(jnp.bfloat16), w4_ref[...],
                preferred_element_type=jnp.float32) + b4_ref[0, 0]
    y_ref[...] = jnp.maximum(y, 0.0)                        # (TILE_B, 1) f32


def beta_network_forward(x, params, *, tile_b=1024):
    """Pallas forward pass.  Returns (x, y, scaled_y) like the PyTorch module."""
    (w1, b1), (w2, b2), (w3, b3), (w4, b4) = params
    batch, state_dim = x.shape

    tile_b, n_tiles, b_pad = _choose_tiling(batch, tile_b)
    xp = x if b_pad == batch else jnp.pad(x, ((0, b_pad - batch), (0, 0)))

    flops = 2 * b_pad * (state_dim * 256 + 256 * 512 + 512 * 256 + 256)
    bytes_accessed = (
        2 * (state_dim * 256 + 256 * 512 + 512 * 256 + 256)   # bf16 weights
        + 4 * (256 + 512 + 256 + 1)                            # f32 biases
        + 4 * b_pad * state_dim + 4 * b_pad)                    # x in, y out

    def const_spec(shape):
        # Same block index every grid step -> stays resident in VMEM.
        return pl.BlockSpec(shape, lambda i: (0, 0))

    y_col = pl.pallas_call(
        _beta_mlp_kernel,
        out_shape=jax.ShapeDtypeStruct((b_pad, 1), jnp.float32),
        grid=(n_tiles,),
        in_specs=[
            pl.BlockSpec((tile_b, state_dim), lambda i: (i, 0)),  # x tile (f32)
            const_spec(w1.shape), const_spec(b1.shape),
            const_spec(w2.shape), const_spec(b2.shape),
            const_spec(w3.shape), const_spec(b3.shape),
            const_spec(w4.shape),
            pl.BlockSpec(memory_space=pltpu.MemorySpace.SMEM),    # b4 scalar
        ],
        out_specs=pl.BlockSpec((tile_b, 1), lambda i: (i, 0)),
        compiler_params=pltpu.CompilerParams(
            dimension_semantics=("parallel",),                    # v7x: both TCs
            vmem_limit_bytes=32 * 1024 * 1024),                   # safe all gens
        cost_estimate=pl.CostEstimate(
            flops=flops, transcendentals=0, bytes_accessed=bytes_accessed),
    )(xp, w1, b1, w2, b2, w3, b3, w4, b4)

    y = y_col[:batch]                    # drop padded rows (they hold ReLU(bias))
    scaled_y = y + 1e-10                 # fuses into surrounding XLA for free
    # TODO(synk): for tiny per-step batches the kernel is weight-DMA/launch
    # bound; amortize the ~0.58 MB weight DMA with cross-call VMEM residency
    # (semaphore+VMEM outputs consumed by the next call) if that path matters.
    return x, y, scaled_y


def init_beta_network_params(key, state_dim):
    """nn.Linear-style uniform(-1/sqrt(fan_in), +1/sqrt(fan_in)) init.

    Weights are (in_features, out_features) bf16 (y = x @ W + b); biases are
    f32 with shape (1, out_features) — so b4 is a (1, 1) scalar.
    """
    dims = [(state_dim, 256), (256, 512), (512, 256), (256, 1)]
    params = []
    for fan_in, fan_out in dims:
        key, kw, kb = jax.random.split(key, 3)
        bound = 1.0 / float(fan_in) ** 0.5
        w = jax.random.uniform(kw, (fan_in, fan_out), jnp.float32, -bound, bound)
        b = jax.random.uniform(kb, (1, fan_out), jnp.float32, -bound, bound)
        params.append((w.astype(jnp.bfloat16), b))
    return params


def _reference_forward(x, params):
    """Pure-JAX reference mirroring the kernel's bf16-storage / f32-accum math."""
    (w1, b1), (w2, b2), (w3, b3), (w4, b4) = params
    h = x.astype(jnp.bfloat16)
    for w, b in ((w1, b1), (w2, b2), (w3, b3)):
        h = jnp.maximum(
            jnp.dot(h, w, preferred_element_type=jnp.float32) + b, 0.0
        ).astype(jnp.bfloat16)
    y = jnp.maximum(
        jnp.dot(h, w4, preferred_element_type=jnp.float32) + b4, 0.0
    ).astype(jnp.float32)
    return x, y, y + 1e-10


if __name__ == "__main__":
    key = jax.random.PRNGKey(0)
    key, kx = jax.random.split(key)

    batch, state_dim = 8, 32
    x = jax.random.normal(kx, (batch, state_dim), jnp.float32)
    params = init_beta_network_params(key, state_dim)

    fwd = jax.jit(functools.partial(beta_network_forward, tile_b=1024))
    x_out, y, scaled_y = fwd(x, params)
    jax.block_until_ready((x_out, y, scaled_y))

    # sanity check against a pure-JAX reference
    _, y_ref, sy_ref = _reference_forward(x, params)
    assert x_out.shape == (batch, state_dim)
    assert y.shape == (batch, 1) and scaled_y.shape == (batch, 1)
    assert jnp.allclose(y, y_ref, atol=1e-2, rtol=1e-2)
    assert jnp.allclose(scaled_y, sy_ref, atol=1e-2, rtol=1e-2)

    print("KERNEL_OK")
</pallas_src>

<mosaic_0001>
module attributes {stable_mosaic.version = 11 : i64} {
  func.func @_beta_mlp_kernel(%arg0: i32, %arg1: memref<8x32xf32, #tpu.memory_space<vmem>>, %arg2: memref<32x256xbf16, #tpu.memory_space<vmem>>, %arg3: memref<1x256xf32, #tpu.memory_space<vmem>>, %arg4: memref<256x512xbf16, #tpu.memory_space<vmem>>, %arg5: memref<1x512xf32, #tpu.memory_space<vmem>>, %arg6: memref<512x256xbf16, #tpu.memory_space<vmem>>, %arg7: memref<1x256xf32, #tpu.memory_space<vmem>>, %arg8: memref<256x1xbf16, #tpu.memory_space<vmem>>, %arg9: memref<1x1xf32, #tpu.memory_space<smem>>, %arg10: memref<8x1xf32, #tpu.memory_space<vmem>>) attributes {dimension_semantics = [#tpu.dimension_semantics<parallel>], iteration_bounds = array<i64: 1>, scalar_prefetch = 0 : i64, scratch_operands = 0 : i64, tpu.core_type = #tpu.core_type<tc>, window_params = [{transform_indices = @transform_0, window_bounds = array<i64: 8, 32>}, {pipeline_mode = #tpu.pipeline_mode<synchronous>, transform_indices = @transform_1, window_bounds = array<i64: 32, 256>}, {pipeline_mode = #tpu.pipeline_mode<synchronous>, transform_indices = @transform_2, window_bounds = array<i64: 1, 256>}, {pipeline_mode = #tpu.pipeline_mode<synchronous>, transform_indices = @transform_3, window_bounds = array<i64: 256, 512>}, {pipeline_mode = #tpu.pipeline_mode<synchronous>, transform_indices = @transform_4, window_bounds = array<i64: 1, 512>}, {pipeline_mode = #tpu.pipeline_mode<synchronous>, transform_indices = @transform_5, window_bounds = array<i64: 512, 256>}, {pipeline_mode = #tpu.pipeline_mode<synchronous>, transform_indices = @transform_6, window_bounds = array<i64: 1, 256>}, {pipeline_mode = #tpu.pipeline_mode<synchronous>, transform_indices = @transform_7, window_bounds = array<i64: 256, 1>}, {transform_indices = @transform_8, window_bounds = array<i64: 1, 1>}, {transform_indices = @transform_9, window_bounds = array<i64: 8, 1>}]} {
    %c0 = arith.constant 0 : index
    %c0_0 = arith.constant 0 : index
    %0 = vector.load %arg1[%c0, %c0_0] : memref<8x32xf32, #tpu.memory_space<vmem>>, vector<8x32xf32>
    %1 = arith.truncf %0 : vector<8x32xf32> to vector<8x32xbf16>
    %c0_1 = arith.constant 0 : index
    %c0_2 = arith.constant 0 : index
    %2 = vector.load %arg2[%c0_1, %c0_2] : memref<32x256xbf16, #tpu.memory_space<vmem>>, vector<32x256xbf16>
    %cst = arith.constant dense<0.000000e+00> : vector<8x256xf32>
    %3 = tpu.matmul %1, %2, %cst {dimension_numbers = #tpu.dot_dimension_numbers<[1], [0], [0], [1], [0, 0, 1, 1], [], []>} : vector<8x32xbf16>, vector<32x256xbf16>, vector<8x256xf32> -> vector<8x256xf32>
    %c0_3 = arith.constant 0 : index
    %c0_4 = arith.constant 0 : index
    %4 = vector.load %arg3[%c0_3, %c0_4] : memref<1x256xf32, #tpu.memory_space<vmem>>, vector<1x256xf32>
    %5 = vector.broadcast %4 : vector<1x256xf32> to vector<8x256xf32>
    %6 = arith.addf %3, %5 : vector<8x256xf32>
    %cst_5 = arith.constant 0.000000e+00 : f32
    %7 = vector.broadcast %cst_5 : f32 to vector<8x256xf32>
    %8 = arith.maximumf %6, %7 : vector<8x256xf32>
    %9 = arith.truncf %8 : vector<8x256xf32> to vector<8x256xbf16>
    %c0_6 = arith.constant 0 : index
    %c0_7 = arith.constant 0 : index
    %10 = vector.load %arg4[%c0_6, %c0_7] : memref<256x512xbf16, #tpu.memory_space<vmem>>, vector<256x512xbf16>
    %cst_8 = arith.constant dense<0.000000e+00> : vector<8x512xf32>
    %11 = tpu.matmul %9, %10, %cst_8 {dimension_numbers = #tpu.dot_dimension_numbers<[1], [0], [0], [1], [0, 0, 1, 1], [], []>} : vector<8x256xbf16>, vector<256x512xbf16>, vector<8x512xf32> -> vector<8x512xf32>
    %c0_9 = arith.constant 0 : index
    %c0_10 = arith.constant 0 : index
    %12 = vector.load %arg5[%c0_9, %c0_10] : memref<1x512xf32, #tpu.memory_space<vmem>>, vector<1x512xf32>
    %13 = vector.broadcast %12 : vector<1x512xf32> to vector<8x512xf32>
    %14 = arith.addf %11, %13 : vector<8x512xf32>
    %cst_11 = arith.constant 0.000000e+00 : f32
    %15 = vector.broadcast %cst_11 : f32 to vector<8x512xf32>
    %16 = arith.maximumf %14, %15 : vector<8x512xf32>
    %17 = arith.truncf %16 : vector<8x512xf32> to vector<8x512xbf16>
    %c0_12 = arith.constant 0 : index
    %c0_13 = arith.constant 0 : index
    %18 = vector.load %arg6[%c0_12, %c0_13] : memref<512x256xbf16, #tpu.memory_space<vmem>>, vector<512x256xbf16>
    %cst_14 = arith.constant dense<0.000000e+00> : vector<8x256xf32>
    %19 = tpu.matmul %17, %18, %cst_14 {dimension_numbers = #tpu.dot_dimension_numbers<[1], [0], [0], [1], [0, 0, 1, 1], [], []>} : vector<8x512xbf16>, vector<512x256xbf16>, vector<8x256xf32> -> vector<8x256xf32>
    %c0_15 = arith.constant 0 : index
    %c0_16 = arith.constant 0 : index
    %20 = vector.load %arg7[%c0_15, %c0_16] : memref<1x256xf32, #tpu.memory_space<vmem>>, vector<1x256xf32>
    %21 = vector.broadcast %20 : vector<1x256xf32> to vector<8x256xf32>
    %22 = arith.addf %19, %21 : vector<8x256xf32>
    %cst_17 = arith.constant 0.000000e+00 : f32
    %23 = vector.broadcast %cst_17 : f32 to vector<8x256xf32>
    %24 = arith.maximumf %22, %23 : vector<8x256xf32>
    %25 = arith.truncf %24 : vector<8x256xf32> to vector<8x256xbf16>
    %c0_18 = arith.constant 0 : index
    %c0_19 = arith.constant 0 : index
    %26 = vector.load %arg8[%c0_18, %c0_19] : memref<256x1xbf16, #tpu.memory_space<vmem>>, vector<256x1xbf16>
    %cst_20 = arith.constant dense<0.000000e+00> : vector<8x1xf32>
    %27 = tpu.matmul %25, %26, %cst_20 {dimension_numbers = #tpu.dot_dimension_numbers<[1], [0], [0], [1], [0, 0, 1, 1], [], []>} : vector<8x256xbf16>, vector<256x1xbf16>, vector<8x1xf32> -> vector<8x1xf32>
    %c0_21 = arith.constant 0 : index
    %c0_22 = arith.constant 0 : index
    %28 = memref.load %arg9[%c0_21, %c0_22] : memref<1x1xf32, #tpu.memory_space<smem>>
    %29 = vector.broadcast %28 : f32 to vector<8x1xf32>
    %30 = arith.addf %27, %29 : vector<8x1xf32>
    %cst_23 = arith.constant 0.000000e+00 : f32
    %31 = vector.broadcast %cst_23 : f32 to vector<8x1xf32>
    %32 = arith.maximumf %30, %31 : vector<8x1xf32>
    %c0_24 = arith.constant 0 : index
    %c0_25 = arith.constant 0 : index
    %33 = vector.load %arg10[%c0_24, %c0_25] : memref<8x1xf32, #tpu.memory_space<vmem>>, vector<8x1xf32>
    tpu.vector_store %arg10[%c0_24, %c0_25], %32 {strides = array<i32>} : memref<8x1xf32, #tpu.memory_space<vmem>>, vector<8x1xf32>,
    return
  }
  func.func @transform_0(%arg0: i32) -> (i32, i32) {
    %c0_i32 = arith.constant 0 : i32
    %c0_i32_0 = arith.constant 0 : i32
    return %arg0, %c0_i32 : i32, i32
  }
  func.func @transform_1(%arg0: i32) -> (i32, i32) {
    %c0_i32 = arith.constant 0 : i32
    %c0_i32_0 = arith.constant 0 : i32
    %c0_i32_1 = arith.constant 0 : i32
    return %c0_i32, %c0_i32_0 : i32, i32
  }
  func.func @transform_2(%arg0: i32) -> (i32, i32) {
    %c0_i32 = arith.constant 0 : i32
    %c0_i32_0 = arith.constant 0 : i32
    %c0_i32_1 = arith.constant 0 : i32
    return %c0_i32, %c0_i32_0 : i32, i32
  }
  func.func @transform_3(%arg0: i32) -> (i32, i32) {
    %c0_i32 = arith.constant 0 : i32
    %c0_i32_0 = arith.constant 0 : i32
    %c0_i32_1 = arith.constant 0 : i32
    return %c0_i32, %c0_i32_0 : i32, i32
  }
  func.func @transform_4(%arg0: i32) -> (i32, i32) {
    %c0_i32 = arith.constant 0 : i32
    %c0_i32_0 = arith.constant 0 : i32
    %c0_i32_1 = arith.constant 0 : i32
    return %c0_i32, %c0_i32_0 : i32, i32
  }
  func.func @transform_5(%arg0: i32) -> (i32, i32) {
    %c0_i32 = arith.constant 0 : i32
    %c0_i32_0 = arith.constant 0 : i32
    %c0_i32_1 = arith.constant 0 : i32
    return %c0_i32, %c0_i32_0 : i32, i32
  }
  func.func @transform_6(%arg0: i32) -> (i32, i32) {
    %c0_i32 = arith.constant 0 : i32
    %c0_i32_0 = arith.constant 0 : i32
    %c0_i32_1 = arith.constant 0 : i32
    return %c0_i32, %c0_i32_0 : i32, i32
  }
  func.func @transform_7(%arg0: i32) -> (i32, i32) {
    %c0_i32 = arith.constant 0 : i32
    %c0_i32_0 = arith.constant 0 : i32
    %c0_i32_1 = arith.constant 0 : i32
    return %c0_i32, %c0_i32_0 : i32, i32
  }
  func.func @transform_8(%arg0: i32) -> (i32, i32) {
    %c0_i32 = arith.constant 0 : i32
    %c0_i32_0 = arith.constant 0 : i32
    %c0_i32_1 = arith.constant 0 : i32
    return %c0_i32, %c0_i32_0 : i32, i32
  }
  func.func @transform_9(%arg0: i32) -> (i32, i32) {
    %c0_i32 = arith.constant 0 : i32
    %c0_i32_0 = arith.constant 0 : i32
    return %arg0, %c0_i32 : i32, i32
  }
}

</mosaic_0001>

<bundles_post_ra>
// kernel: beta_network_forward.1
= control target key start
LH: loop header
LB: loop body
LE: loop exit
PB: predicated region body
PF: predicated region fallthrough
CT: control target
= control target key end

     0   :  { %15 = vsyncpa [#allocation4], 0  ;;  %s1937_s0 = inlined_call_operand.vmem [shape: f32[8,32], index: 0, kind: input, shape index: {}]   ;;  %s1938_s1 = inlined_call_operand.vmem [shape: bf16[32,256], index: 1, kind: input, shape index: {}]   ;;  %s1939_s2 = inlined_call_operand.vmem [shape: f32[1,256], index: 2, kind: input, shape index: {}]   ;;  %s1940_s3 = inlined_call_operand.hbm [shape: bf16[256,512], index: 3, kind: input, shape index: {}]   ;;  %s1941_s4 = inlined_call_operand.vmem [shape: f32[1,512], index: 4, kind: input, shape index: {}]   ;;  %s1942_s5 = inlined_call_operand.hbm [shape: bf16[512,256], index: 5, kind: input, shape index: {}]   ;;  %s1943_s6 = inlined_call_operand.vmem [shape: f32[1,256], index: 6, kind: input, shape index: {}]   ;;  %s1944_s7 = inlined_call_operand.vmem [shape: bf16[256,1], index: 7, kind: input, shape index: {}]   ;;  %s1945_s8 = inlined_call_operand.<no memory space> [shape: f32[1,1], index: 8, kind: input, shape index: {}]   ;;  %s1946_s9 = inlined_call_operand.vmem [shape: f32[8,1], index: 9, kind: output, shape index: {}]  }
   0x1   :  { %16 = vsyncpa [#allocation6], 0  ;;  %s1752_s30 = smov [#allocation3]   ;;  %s1704_s13 = scalar_lea.hbm %s1940_s3, 8192 }
   0x2   :  { %s28_s10 = sshll.u32 %s1752_s30, 4  ;;  %p1705_p0 = scmp.ne.s32.totalorder %s1940_s3, %s1704_s13  ;;  %s29_s10 = int_to_ptr.vmem [resolvable:$true] %s28_s10 }
   0x3   :  { %p1708_p1 = scmp.lt.u32.totalorder %s1704_s13, %s1940_s3 }
   0x5   :  { %p1710_p2 = pnand %p1708_p1, %p1705_p0 }
   0x7   :  { %1713 = shalt.err (!%p1710_p2)
}
   0x8   :  { %s1714_s18 = scalar_lea.vmem %s29_s10, 8192  ;;  %p1719_p4 = scmp.lt.s32.totalorder %s29_s10, %s29_s10 }
   0x9   :  { %p1715_p3 = scmp.ne.s32.totalorder %s29_s10, %s1714_s18  ;;  %p1720_p5 = scmp.lt.s32.totalorder %s1714_s18, %s1714_s18 }
   0xb   :  { %p1721_p6 = por %p1720_p5, %p1719_p4 }
   0xd   :  { %p1722_p7 = pnand %p1721_p6, %p1715_p3 }
   0xf   :  { %1725 = shalt.err (!%p1722_p7)
}
  0x10   :  { %s1753_s19 = smov 256   ;;  %s1754_s20 = smov 16  }
  0x11   :  { %34 = dma.hbm_to_vmem [thread:$0]  %s1940_s3, 8192, %s29_s10, [#allocation4], %s1753_s19, %s1753_s19, %s1754_s20  }
  0x12   :  { %s1755_s23 = smov [#allocation5]   ;;  %s1726_s27 = scalar_lea.hbm %s1942_s5, 8192 }
  0x13   :  { %s42_s24 = sshll.u32 %s1755_s23, 4  ;;  %p1727_p8 = scmp.ne.s32.totalorder %s1942_s5, %s1726_s27  ;;  %s43_s24 = int_to_ptr.vmem [resolvable:$true] %s42_s24 }
  0x14   :  { %p1730_p9 = scmp.lt.u32.totalorder %s1726_s27, %s1942_s5 }
  0x16   :  { %p1732_p10 = pnand %p1730_p9, %p1727_p8 }
  0x18   :  { %1735 = shalt.err (!%p1732_p10)
}
  0x19   :  { %s1736_s12 = scalar_lea.vmem %s43_s24, 8192  ;;  %p1741_p12 = scmp.lt.s32.totalorder %s43_s24, %s43_s24 }
  0x1a   :  { %p1737_p11 = scmp.ne.s32.totalorder %s43_s24, %s1736_s12  ;;  %p1742_p13 = scmp.lt.s32.totalorder %s1736_s12, %s1736_s12 }
  0x1c   :  { %p1743_p0 = por %p1742_p13, %p1741_p12 }
  0x1e   :  { %p1744_p1 = pnand %p1743_p0, %p1737_p11 }
  0x20   :  { %1747 = shalt.err (!%p1744_p1)
}
  0x21   :  { %s1756_s3 = smov 128   ;;  %s1757_s10 = smov 8  }
  0x22   :  { %48 = dma.hbm_to_vmem [thread:$0]  %s1942_s5, 8192, %s43_s24, [#allocation6], %s1756_s3, %s1756_s3, %s1757_s10  }
  0x23   :  { %1748 = dma.done.wait [#allocation4], 8192  }
  0x24   :  { %1749 = vsyncadd [#allocation4], 4294959104 }
  0x25   :  { %1750 = dma.done.wait [#allocation6], 8192  }
  0x26   :  { %1751 = vsyncadd [#allocation6], 4294959104  ;;  %v1758_v0 = vmov 0   ;;  %v1490_v1 = vld [vmem:[%s1938_s1 + $0x4] ss:$8 sps:$4 sm:$0xff]   ;;  %vm100_vm0 = vcmask 261120   ;;  %v70_v62 = vlaneseq }
  0x27   :  { %136 = vmatprep.mubr.bf16.mxu1 %v1758_v0  ;;  %v1492_v2 = vld [vmem:[%s1938_s1] ss:$8 sps:$4 sm:$0xff]   ;;  %104 = vmatprep.subr.bf16.mxu1 %v1490_v1  ;;  %v1493_v3 = vld [vmem:[%s1938_s1 + $0x14] ss:$8 sps:$4 sm:$0xff]   ;;  %v1495_v4 = vld [vmem:[%s1938_s1 + $0x10] ss:$8 sps:$4 sm:$0xff]  }
  0x28   :  { %v62_v5 = vld [vmem:[%s1937_s0] sm:$0xff]  ;;  %105 = vmatpush1.bf16.msra.mxu1 %v1492_v2  ;;  %v1546_v39 = vld [vmem:[#allocation3 + $0xc] ss:$16 sps:$4 sm:$0xff]   ;;  %v1595_v43 = vld [vmem:[#allocation5 + $0x10] ss:$8 sps:$4 sm:$0xff]   ;;  %v1848_v1 = vshrl.u32 %v70_v62, 7 }
  0x29   :  { %v1496_v6 = vld [vmem:[#allocation3 + $0x4] ss:$16 sps:$4 sm:$0xff]   ;;  %106 = vmatprep.subr.bf16.mxu1 %v1493_v3  ;;  %v1498_v7 = vld [vmem:[#allocation3] ss:$16 sps:$4 sm:$0xff]   ;;  %v63_v9 = vpack.c.bf16 %v62_v5, %v62_v5  ;;  %vm1298_vm1 = vcmask 7168  }
  0x2a   :  { %555 = vmatprep.subr.bf16.mxu0 %v1496_v6  ;;  %v1499_v8 = vld [vmem:[#allocation3 + $0x24] ss:$16 sps:$4 sm:$0xff]   ;;  %v1501_v10 = vld [vmem:[#allocation3 + $0x20] ss:$16 sps:$4 sm:$0xff]  }
  0x2b   :  { %556 = vmatpush1.bf16.msra.mxu0 %v1498_v7  ;;  %v1502_v11 = vld [vmem:[#allocation3 + $0x44] ss:$16 sps:$4 sm:$0xff]   ;;  %v1504_v12 = vld [vmem:[#allocation3 + $0x40] ss:$16 sps:$4 sm:$0xff]   ;;  %v1857_v7 = vsub.s32 1, %v1848_v1 }
  0x2c   :  { %107 = vmatpush1.bf16.msra.mxu1 %v1495_v4  ;;  %557 = vmatprep.subr.bf16.mxu0 %v1499_v8  ;;  %v1505_v13 = vld [vmem:[#allocation3 + $0x64] ss:$16 sps:$4 sm:$0xff]   ;;  %v1507_v14 = vld [vmem:[#allocation3 + $0x60] ss:$16 sps:$4 sm:$0xff]   ;;  %v1851_v4 = vsub.s32 0, %v1848_v1 }
  0x2d   :  { %v1508_v15 = vld [vmem:[#allocation3 + $0x84] ss:$16 sps:$4 sm:$0xff]   ;;  %v1510_v16 = vld [vmem:[#allocation3 + $0x80] ss:$16 sps:$4 sm:$0xff]  }
  0x2e   :  { %v1511_v17 = vld [vmem:[#allocation3 + $0xa4] ss:$16 sps:$4 sm:$0xff]   ;;  %v1513_v18 = vld [vmem:[#allocation3 + $0xa0] ss:$16 sps:$4 sm:$0xff]  }
  0x2f   :  { %1310 = vmatmul.mubr.msk.bf16.vlgmr.msra.gmra.mrb[0].mxu1 %vm100_vm0, %v63_v9  ;;  %558 = vmatpush1.bf16.msra.mxu0 %v1501_v10  ;;  %v1514_v19 = vld [vmem:[#allocation3 + $0xc4] ss:$16 sps:$4 sm:$0xff]   ;;  %v1516_v20 = vld [vmem:[#allocation3 + $0xc0] ss:$16 sps:$4 sm:$0xff]  }
  0x30   :  { %559 = vmatprep.subr.bf16.mxu0 %v1502_v11  ;;  %v1517_v21 = vld [vmem:[#allocation3 + $0xe4] ss:$16 sps:$4 sm:$0xff]   ;;  %v1519_v22 = vld [vmem:[#allocation3 + $0xe0] ss:$16 sps:$4 sm:$0xff]  }
  0x31   :  { %v1520_v23 = vld [vmem:[#allocation3 + $0x104] ss:$16 sps:$4 sm:$0xff]   ;;  %v1522_v24 = vld [vmem:[#allocation3 + $0x100] ss:$16 sps:$4 sm:$0xff]  }
  0x32   :  { %v1523_v25 = vld [vmem:[#allocation3 + $0x124] ss:$16 sps:$4 sm:$0xff]   ;;  %v1525_v26 = vld [vmem:[#allocation3 + $0x120] ss:$16 sps:$4 sm:$0xff]  }
  0x33   :  { %560 = vmatpush1.bf16.msra.mxu0 %v1504_v12  ;;  %v1526_v27 = vld [vmem:[#allocation3 + $0x144] ss:$16 sps:$4 sm:$0xff]   ;;  %v1528_v28 = vld [vmem:[#allocation3 + $0x140] ss:$16 sps:$4 sm:$0xff]  }
  0x34   :  { %561 = vmatprep.subr.bf16.mxu0 %v1505_v13  ;;  %v1529_v29 = vld [vmem:[#allocation3 + $0x164] ss:$16 sps:$4 sm:$0xff]   ;;  %v1531_v30 = vld [vmem:[#allocation3 + $0x160] ss:$16 sps:$4 sm:$0xff]  }
  0x35   :  { %v1532_v31 = vld [vmem:[#allocation3 + $0x184] ss:$16 sps:$4 sm:$0xff]   ;;  %v1534_v32 = vld [vmem:[#allocation3 + $0x180] ss:$16 sps:$4 sm:$0xff]  }
  0x36   :  { %v1535_v33 = vld [vmem:[#allocation3 + $0x1a4] ss:$16 sps:$4 sm:$0xff]   ;;  %v1537_v34 = vld [vmem:[#allocation3 + $0x1a0] ss:$16 sps:$4 sm:$0xff]  }
  0x37   :  { %562 = vmatpush1.bf16.msra.mxu0 %v1507_v14  ;;  %v1538_v35 = vld [vmem:[#allocation3 + $0x1c4] ss:$16 sps:$4 sm:$0xff]   ;;  %v1540_v36 = vld [vmem:[#allocation3 + $0x1c0] ss:$16 sps:$4 sm:$0xff]  }
  0x38   :  { %563 = vmatprep.subr.bf16.mxu0 %v1508_v15  ;;  %v1541_v37 = vld [vmem:[#allocation3 + $0x1e4] ss:$16 sps:$4 sm:$0xff]   ;;  %v1543_v38 = vld [vmem:[#allocation3 + $0x1e0] ss:$16 sps:$4 sm:$0xff]  }
  0x39   :  { %v1592_v40 = vld [vmem:[#allocation5] ss:$8 sps:$4 sm:$0xff]   ;;  %v1594_v41 = vld [vmem:[#allocation5 + $0x4] ss:$8 sps:$4 sm:$0xff]   ;;  %v1597_v42 = vld [vmem:[#allocation5 + $0x14] ss:$8 sps:$4 sm:$0xff]  }
  0x3a   :  { %1041 = vmatprep.subr.bf16.mxu1 %v1594_v41  ;;  %v1600_v44 = vld [vmem:[#allocation5 + $0x24] ss:$8 sps:$4 sm:$0xff]   ;;  %v1598_v45 = vld [vmem:[#allocation5 + $0x20] ss:$8 sps:$4 sm:$0xff]   ;;  %v1603_v46 = vld [vmem:[#allocation5 + $0x34] ss:$8 sps:$4 sm:$0xff]  }
  0x3b   :  { %564 = vmatpush1.bf16.msra.mxu0 %v1510_v16  ;;  %1042 = vmatpush1.bf16.msra.mxu1 %v1592_v40  ;;  %v1601_v47 = vld [vmem:[#allocation5 + $0x30] ss:$8 sps:$4 sm:$0xff]   ;;  %v1606_v48 = vld [vmem:[#allocation5 + $0x44] ss:$8 sps:$4 sm:$0xff]   ;;  %v1604_v49 = vld [vmem:[#allocation5 + $0x40] ss:$8 sps:$4 sm:$0xff]  }
  0x3c   :  { %565 = vmatprep.subr.bf16.mxu0 %v1511_v17  ;;  %1043 = vmatprep.subr.bf16.mxu1 %v1597_v42  ;;  %v1609_v50 = vld [vmem:[#allocation5 + $0x54] ss:$8 sps:$4 sm:$0xff]   ;;  %v1607_v51 = vld [vmem:[#allocation5 + $0x50] ss:$8 sps:$4 sm:$0xff]   ;;  %v1612_v52 = vld [vmem:[#allocation5 + $0x64] ss:$8 sps:$4 sm:$0xff]  }
  0x3d   :  { %v1610_v53 = vld [vmem:[#allocation5 + $0x60] ss:$8 sps:$4 sm:$0xff]   ;;  %v1615_v54 = vld [vmem:[#allocation5 + $0x74] ss:$8 sps:$4 sm:$0xff]   ;;  %v1613_v55 = vld [vmem:[#allocation5 + $0x70] ss:$8 sps:$4 sm:$0xff]  }
  0x3e   :  { %v1618_v56 = vld [vmem:[#allocation5 + $0x84] ss:$8 sps:$4 sm:$0xff]   ;;  %v1616_v57 = vld [vmem:[#allocation5 + $0x80] ss:$8 sps:$4 sm:$0xff]   ;;  %v1621_v58 = vld [vmem:[#allocation5 + $0x94] ss:$8 sps:$4 sm:$0xff]  }
  0x3f   :  { %566 = vmatpush1.bf16.msra.mxu0 %v1513_v18  ;;  %1044 = vmatpush1.bf16.msra.mxu1 %v1595_v43  ;;  %v1619_v59 = vld [vmem:[#allocation5 + $0x90] ss:$8 sps:$4 sm:$0xff]   ;;  %v1624_v60 = vld [vmem:[#allocation5 + $0xa4] ss:$8 sps:$4 sm:$0xff]   ;;  %v1622_v61 = vld [vmem:[#allocation5 + $0xa0] ss:$8 sps:$4 sm:$0xff]  }
  0x40   :  { %567 = vmatprep.subr.bf16.mxu0 %v1514_v19  ;;  %1045 = vmatprep.subr.bf16.mxu1 %v1600_v44  ;;  %v1627_v63 = vld [vmem:[#allocation5 + $0xb4] ss:$8 sps:$4 sm:$0xff]   ;;  %v1625_v0 = vld [vmem:[#allocation5 + $0xb0] ss:$8 sps:$4 sm:$0xff]   ;;  %v1630_v2 = vld [vmem:[#allocation5 + $0xc4] ss:$8 sps:$4 sm:$0xff]  }
  0x41   :  { %v1628_v3 = vld [vmem:[#allocation5 + $0xc0] ss:$8 sps:$4 sm:$0xff]   ;;  %v1633_v5 = vld [vmem:[#allocation5 + $0xd4] ss:$8 sps:$4 sm:$0xff]   ;;  %v1631_v8 = vld [vmem:[#allocation5 + $0xd0] ss:$8 sps:$4 sm:$0xff]  }
  0x42   :  { %v68_v6 = vld [vmem:[%s1939_s2] sm:$0x3]  ;;  %v1576_v40 = vld [vmem:[#allocation3 + $0x14c] ss:$16 sps:$4 sm:$0xff]   ;;  %v1574_v41 = vld [vmem:[#allocation3 + $0x148] ss:$16 sps:$4 sm:$0xff]  }
  0x43   :  { %568 = vmatpush1.bf16.msra.mxu0 %v1516_v20  ;;  %1046 = vmatpush1.bf16.msra.mxu1 %v1598_v45  ;;  %v73_v9 = vrot.slane %v68_v6, %v1851_v4  ;;  %v77_v10 = vrot.slane %v68_v6, %v1857_v7  ;;  %v1544_v20 = vld [vmem:[#allocation3 + $0x8] ss:$16 sps:$4 sm:$0xff]   ;;  %v1579_v42 = vld [vmem:[#allocation3 + $0x16c] ss:$16 sps:$4 sm:$0xff]   ;;  %v1693_v62 = vld [vmem:[%s1944_s7 + $0x10] sm:$0xff]  }
  0x44   :  { %569 = vmatprep.subr.bf16.mxu0 %v1517_v21  ;;  %1047 = vmatprep.subr.bf16.mxu1 %v1603_v46  ;;  %v1577_v43 = vld [vmem:[#allocation3 + $0x168] ss:$16 sps:$4 sm:$0xff]   ;;  %v1582_v44 = vld [vmem:[#allocation3 + $0x18c] ss:$16 sps:$4 sm:$0xff]  }
  0x45   :  { %v1580_v45 = vld [vmem:[#allocation3 + $0x188] ss:$16 sps:$4 sm:$0xff]   ;;  %v1585_v46 = vld [vmem:[#allocation3 + $0x1ac] ss:$16 sps:$4 sm:$0xff]  }
  0x46   :  { %v1699_v6 = vld [vmem:[%s1944_s7 + $0x28] sm:$0xff]  }
  0x47   :  { %570 = vmatpush1.bf16.msra.mxu0 %v1519_v22  ;;  %1048 = vmatpush1.bf16.msra.mxu1 %v1601_v47  ;;  %v1549_v22 = vld [vmem:[#allocation3 + $0x2c] ss:$16 sps:$4 sm:$0xff]   ;;  %v1583_v47 = vld [vmem:[#allocation3 + $0x1a8] ss:$16 sps:$4 sm:$0xff]  }
  0x48   :  { %571 = vmatprep.subr.bf16.mxu0 %v1520_v23  ;;  %1049 = vmatprep.subr.bf16.mxu1 %v1606_v48  ;;  %v1547_v23 = vld [vmem:[#allocation3 + $0x28] ss:$16 sps:$4 sm:$0xff]   ;;  %v1588_v48 = vld [vmem:[#allocation3 + $0x1cc] ss:$16 sps:$4 sm:$0xff]  }
  0x4b   :  { %572 = vmatpush1.bf16.msra.mxu0 %v1522_v24  ;;  %1050 = vmatpush1.bf16.msra.mxu1 %v1604_v49  ;;  %v1552_v24 = vld [vmem:[#allocation3 + $0x4c] ss:$16 sps:$4 sm:$0xff]   ;;  %v1586_v49 = vld [vmem:[#allocation3 + $0x1c8] ss:$16 sps:$4 sm:$0xff]  }
  0x4c   :  { %573 = vmatprep.subr.bf16.mxu0 %v1523_v25  ;;  %1051 = vmatprep.subr.bf16.mxu1 %v1609_v50  ;;  %v1550_v25 = vld [vmem:[#allocation3 + $0x48] ss:$16 sps:$4 sm:$0xff]   ;;  %v1591_v50 = vld [vmem:[#allocation3 + $0x1ec] ss:$16 sps:$4 sm:$0xff]  }
  0x4f   :  { %574 = vmatpush1.bf16.msra.mxu0 %v1525_v26  ;;  %1052 = vmatpush1.bf16.msra.mxu1 %v1607_v51  ;;  %v1555_v26 = vld [vmem:[#allocation3 + $0x6c] ss:$16 sps:$4 sm:$0xff]   ;;  %v1589_v51 = vld [vmem:[#allocation3 + $0x1e8] ss:$16 sps:$4 sm:$0xff]  }
  0x50   :  { %575 = vmatprep.subr.bf16.mxu0 %v1526_v27  ;;  %1053 = vmatprep.subr.bf16.mxu1 %v1612_v52  ;;  %v1553_v27 = vld [vmem:[#allocation3 + $0x68] ss:$16 sps:$4 sm:$0xff]   ;;  %v1636_v52 = vld [vmem:[#allocation5 + $0xe4] ss:$8 sps:$4 sm:$0xff]  }
  0x53   :  { %576 = vmatpush1.bf16.msra.mxu0 %v1528_v28  ;;  %1054 = vmatpush1.bf16.msra.mxu1 %v1610_v53  ;;  %v1558_v28 = vld [vmem:[#allocation3 + $0x8c] ss:$16 sps:$4 sm:$0xff]   ;;  %v1634_v53 = vld [vmem:[#allocation5 + $0xe0] ss:$8 sps:$4 sm:$0xff]  }
  0x54   :  { %577 = vmatprep.subr.bf16.mxu0 %v1529_v29  ;;  %1055 = vmatprep.subr.bf16.mxu1 %v1615_v54  ;;  %v1556_v29 = vld [vmem:[#allocation3 + $0x88] ss:$16 sps:$4 sm:$0xff]   ;;  %v1639_v54 = vld [vmem:[#allocation5 + $0xf4] ss:$8 sps:$4 sm:$0xff]  }
  0x57   :  { %578 = vmatpush1.bf16.msra.mxu0 %v1531_v30  ;;  %1056 = vmatpush1.bf16.msra.mxu1 %v1613_v55  ;;  %v1561_v30 = vld [vmem:[#allocation3 + $0xac] ss:$16 sps:$4 sm:$0xff]   ;;  %v1637_v55 = vld [vmem:[#allocation5 + $0xf0] ss:$8 sps:$4 sm:$0xff]  }
  0x58   :  { %579 = vmatprep.subr.bf16.mxu0 %v1532_v31  ;;  %1057 = vmatprep.subr.bf16.mxu1 %v1618_v56  ;;  %v1559_v31 = vld [vmem:[#allocation3 + $0xa8] ss:$16 sps:$4 sm:$0xff]   ;;  %v1642_v56 = vld [vmem:[#allocation5 + $0x104] ss:$8 sps:$4 sm:$0xff]  }
  0x5b   :  { %580 = vmatpush1.bf16.msra.mxu0 %v1534_v32  ;;  %1058 = vmatpush1.bf16.msra.mxu1 %v1616_v57  ;;  %v1564_v32 = vld [vmem:[#allocation3 + $0xcc] ss:$16 sps:$4 sm:$0xff]   ;;  %v1688_v57 = vld [vmem:[%s1944_s7 + $0x40] sm:$0xff]  }
  0x5c   :  { %581 = vmatprep.subr.bf16.mxu0 %v1535_v33  ;;  %1059 = vmatprep.subr.bf16.mxu1 %v1621_v58  ;;  %v1562_v33 = vld [vmem:[#allocation3 + $0xc8] ss:$16 sps:$4 sm:$0xff]   ;;  %v1689_v58 = vld [vmem:[%s1944_s7] sm:$0xff]  }
  0x5f   :  { %582 = vmatpush1.bf16.msra.mxu0 %v1537_v34  ;;  %1060 = vmatpush1.bf16.msra.mxu1 %v1619_v59  ;;  %v1567_v34 = vld [vmem:[#allocation3 + $0xec] ss:$16 sps:$4 sm:$0xff]  }
  0x60   :  { %583 = vmatprep.subr.bf16.mxu0 %v1538_v35  ;;  %1061 = vmatprep.subr.bf16.mxu1 %v1624_v60  ;;  %v1565_v35 = vld [vmem:[#allocation3 + $0xe8] ss:$16 sps:$4 sm:$0xff]  }
  0x61   :  { %v1690_v59 = vld [vmem:[%s1944_s7 + $0x48] sm:$0xff]  }
  0x62   :  { %v1691_v60 = vld [vmem:[%s1944_s7 + $0x8] sm:$0xff]  }
  0x63   :  { %584 = vmatpush1.bf16.msra.mxu0 %v1540_v36  ;;  %1062 = vmatpush1.bf16.msra.mxu1 %v1622_v61  ;;  %v1570_v36 = vld [vmem:[#allocation3 + $0x10c] ss:$16 sps:$4 sm:$0xff]   ;;  %v1692_v61 = vld [vmem:[%s1944_s7 + $0x50] sm:$0xff]  }
  0x64   :  { %585 = vmatprep.subr.bf16.mxu0 %v1541_v37  ;;  %1063 = vmatprep.subr.bf16.mxu1 %v1627_v63  ;;  %v1568_v37 = vld [vmem:[#allocation3 + $0x108] ss:$16 sps:$4 sm:$0xff]  }
  0x65   :  { %v1694_v63 = vld [vmem:[%s1944_s7 + $0x58] sm:$0xff]  }
  0x67   :  { %586 = vmatpush1.bf16.msra.mxu0 %v1543_v38  ;;  %1064 = vmatpush1.bf16.msra.mxu1 %v1625_v0  ;;  %v1573_v38 = vld [vmem:[#allocation3 + $0x12c] ss:$16 sps:$4 sm:$0xff]  }
  0x68   :  { %596 = vmatprep.subr.bf16.mxu0 %v1546_v39  ;;  %1065 = vmatprep.subr.bf16.mxu1 %v1630_v2  ;;  %v1571_v39 = vld [vmem:[#allocation3 + $0x128] ss:$16 sps:$4 sm:$0xff]   ;;  %v1696_v2 = vld [vmem:[%s1944_s7 + $0x60] sm:$0xff]  }
  0x69   :  { %v1695_v0 = vld [vmem:[%s1944_s7 + $0x18] sm:$0xff]  }
  0x6b   :  { %1066 = vmatpush1.bf16.msra.mxu1 %v1628_v3  ;;  %v1697_v3 = vld [vmem:[%s1944_s7 + $0x20] sm:$0xff]  }
  0x6c   :  { %1067 = vmatprep.subr.bf16.mxu1 %v1633_v5  ;;  %v1698_v5 = vld [vmem:[%s1944_s7 + $0x68] sm:$0xff]  }
  0x6f   :  { %1068 = vmatpush1.bf16.msra.mxu1 %v1631_v8  ;;  %v1904_v8 = vld [vmem:[%s1941_s4] sm:$0xf] }
  0x70   :  { %1069 = vmatprep.subr.bf16.mxu1 %v1636_v52 }
  0x73   :  { %1070 = vmatpush1.bf16.msra.mxu1 %v1634_v53  ;;  %v1682_v53 = vld [vmem:[#allocation5 + $0x1e0] ss:$8 sps:$4 sm:$0xff]  }
  0x74   :  { %1071 = vmatprep.subr.bf16.mxu1 %v1639_v54  ;;  %v1687_v54 = vld [vmem:[#allocation5 + $0x1f4] ss:$8 sps:$4 sm:$0xff]  }
  0x77   :  { %1072 = vmatpush1.bf16.msra.mxu1 %v1637_v55 }
  0x78   :  { %1082 = vmatprep.subr.bf16.mxu1 %v1642_v56 }
 0x102   :  { %v138_v11 = vpop.f32.mrb[0].mxu1 }
 0x103   :  { %v139_v12 = vadd.f32 %v138_v11, %v73_v9  ;;  %v140_v13 = vpop.f32.mrb[1].mxu1  ;;  %v218_v9 = vrot.slane %v1904_v8, %v1851_v4 }
 0x104   :  { %v141_v14 = vadd.f32 %v140_v13, %v77_v10  ;;  %v142_v15 = vpop.f32.mrb[2].mxu1  ;;  %v222_v10 = vrot.slane %v1904_v8, %v1857_v7 }
 0x105   :  { %v145_v16 = vmax.f32 %v139_v12, 0.0  ;;  %v143_v17 = vpop.f32.mrb[3].mxu1 }
 0x106   :  { %v146_v18 = vmax.f32 %v141_v14, 0.0 }
 0x107   :  { %v1861_v21 = vpack.c.bf16 %v145_v16, %v145_v16 }
 0x108   :  { %v148_v19 = vpack.c.bf16 %v146_v18, %v146_v18 }
 0x10a   :  { %587 = vmatprep.mubr.bf16.mxu0 %v148_v19 }
 0x10b   :  { %588 = vmatmul.mubr.bf16.vlgmr.msra.gmra.mrb[0].mxu0 %v1861_v21 }
 0x10c   :  { %597 = vmatpush1.bf16.msra.mxu0 %v1544_v20  ;;  %628 = vmatprep.mubr.bf16.mxu0 %v148_v19  ;;  %v1640_v20 = vld [vmem:[#allocation5 + $0x100] ss:$8 sps:$4 sm:$0xff]  }
 0x10d   :  { %598 = vmatprep.subr.bf16.mxu0 %v1549_v22  ;;  %v1645_v22 = vld [vmem:[#allocation5 + $0x114] ss:$8 sps:$4 sm:$0xff]  }
 0x110   :  { %599 = vmatpush1.bf16.msra.mxu0 %v1547_v23  ;;  %v1643_v23 = vld [vmem:[#allocation5 + $0x110] ss:$8 sps:$4 sm:$0xff]  }
 0x111   :  { %600 = vmatprep.subr.bf16.mxu0 %v1552_v24  ;;  %v1648_v24 = vld [vmem:[#allocation5 + $0x124] ss:$8 sps:$4 sm:$0xff]  }
 0x114   :  { %601 = vmatpush1.bf16.msra.mxu0 %v1550_v25  ;;  %v1646_v25 = vld [vmem:[#allocation5 + $0x120] ss:$8 sps:$4 sm:$0xff]  }
 0x115   :  { %602 = vmatprep.subr.bf16.mxu0 %v1555_v26  ;;  %v1651_v26 = vld [vmem:[#allocation5 + $0x134] ss:$8 sps:$4 sm:$0xff]  }
 0x118   :  { %603 = vmatpush1.bf16.msra.mxu0 %v1553_v27  ;;  %v1649_v27 = vld [vmem:[#allocation5 + $0x130] ss:$8 sps:$4 sm:$0xff]  }
 0x119   :  { %604 = vmatprep.subr.bf16.mxu0 %v1558_v28  ;;  %v1654_v28 = vld [vmem:[#allocation5 + $0x144] ss:$8 sps:$4 sm:$0xff]  }
 0x11c   :  { %605 = vmatpush1.bf16.msra.mxu0 %v1556_v29  ;;  %v1652_v29 = vld [vmem:[#allocation5 + $0x140] ss:$8 sps:$4 sm:$0xff]  }
 0x11d   :  { %606 = vmatprep.subr.bf16.mxu0 %v1561_v30  ;;  %v1657_v30 = vld [vmem:[#allocation5 + $0x154] ss:$8 sps:$4 sm:$0xff]  }
 0x120   :  { %607 = vmatpush1.bf16.msra.mxu0 %v1559_v31  ;;  %v1655_v31 = vld [vmem:[#allocation5 + $0x150] ss:$8 sps:$4 sm:$0xff]  }
 0x121   :  { %608 = vmatprep.subr.bf16.mxu0 %v1564_v32  ;;  %v1660_v32 = vld [vmem:[#allocation5 + $0x164] ss:$8 sps:$4 sm:$0xff]  }
 0x124   :  { %609 = vmatpush1.bf16.msra.mxu0 %v1562_v33  ;;  %v1658_v33 = vld [vmem:[#allocation5 + $0x160] ss:$8 sps:$4 sm:$0xff]  }
 0x125   :  { %610 = vmatprep.subr.bf16.mxu0 %v1567_v34  ;;  %v1663_v34 = vld [vmem:[#allocation5 + $0x174] ss:$8 sps:$4 sm:$0xff]  }
 0x128   :  { %611 = vmatpush1.bf16.msra.mxu0 %v1565_v35  ;;  %v1661_v35 = vld [vmem:[#allocation5 + $0x170] ss:$8 sps:$4 sm:$0xff]  }
 0x129   :  { %612 = vmatprep.subr.bf16.mxu0 %v1570_v36  ;;  %v1666_v36 = vld [vmem:[#allocation5 + $0x184] ss:$8 sps:$4 sm:$0xff]  }
 0x12c   :  { %613 = vmatpush1.bf16.msra.mxu0 %v1568_v37  ;;  %v1664_v37 = vld [vmem:[#allocation5 + $0x180] ss:$8 sps:$4 sm:$0xff]  }
 0x12d   :  { %614 = vmatprep.subr.bf16.mxu0 %v1573_v38  ;;  %v1669_v38 = vld [vmem:[#allocation5 + $0x194] ss:$8 sps:$4 sm:$0xff]  }
 0x130   :  { %615 = vmatpush1.bf16.msra.mxu0 %v1571_v39  ;;  %v1667_v39 = vld [vmem:[#allocation5 + $0x190] ss:$8 sps:$4 sm:$0xff]  }
 0x131   :  { %616 = vmatprep.subr.bf16.mxu0 %v1576_v40  ;;  %v1672_v40 = vld [vmem:[#allocation5 + $0x1a4] ss:$8 sps:$4 sm:$0xff]  }
 0x134   :  { %617 = vmatpush1.bf16.msra.mxu0 %v1574_v41  ;;  %v1670_v41 = vld [vmem:[#allocation5 + $0x1a0] ss:$8 sps:$4 sm:$0xff]  }
 0x135   :  { %618 = vmatprep.subr.bf16.mxu0 %v1579_v42  ;;  %v1675_v42 = vld [vmem:[#allocation5 + $0x1b4] ss:$8 sps:$4 sm:$0xff]  }
 0x138   :  { %619 = vmatpush1.bf16.msra.mxu0 %v1577_v43  ;;  %v1673_v43 = vld [vmem:[#allocation5 + $0x1b0] ss:$8 sps:$4 sm:$0xff]  }
 0x139   :  { %620 = vmatprep.subr.bf16.mxu0 %v1582_v44  ;;  %v1678_v44 = vld [vmem:[#allocation5 + $0x1c4] ss:$8 sps:$4 sm:$0xff]  }
 0x13c   :  { %621 = vmatpush1.bf16.msra.mxu0 %v1580_v45  ;;  %v1676_v45 = vld [vmem:[#allocation5 + $0x1c0] ss:$8 sps:$4 sm:$0xff]  }
 0x13d   :  { %622 = vmatprep.subr.bf16.mxu0 %v1585_v46  ;;  %v1681_v46 = vld [vmem:[#allocation5 + $0x1d4] ss:$8 sps:$4 sm:$0xff]  }
 0x140   :  { %623 = vmatpush1.bf16.msra.mxu0 %v1583_v47  ;;  %v225_v47 = vsub.s32 2, %v1848_v1 }
 0x141   :  { %624 = vmatprep.subr.bf16.mxu0 %v1588_v48  ;;  %v1679_v48 = vld [vmem:[#allocation5 + $0x1d0] ss:$8 sps:$4 sm:$0xff]  }
 0x144   :  { %625 = vmatpush1.bf16.msra.mxu0 %v1586_v49  ;;  %v229_v49 = vsub.s32 3, %v1848_v1 }
 0x145   :  { %626 = vmatprep.subr.bf16.mxu0 %v1591_v50  ;;  %v1684_v50 = vld [vmem:[#allocation5 + $0x1e4] ss:$8 sps:$4 sm:$0xff]  }
 0x146   :  { %v230_v52 = vrot.slane %v1904_v8, %v229_v49 }
 0x148   :  { %627 = vmatpush1.bf16.msra.mxu0 %v1589_v51  ;;  %v226_v51 = vrot.slane %v1904_v8, %v225_v47  ;;  %v709_v8 = vld [vmem:[%s1943_s6] sm:$0x3] }
 0x149   :  { %1455 = vmatprep.subr.bf16.mxu0 %v1688_v57 }
 0x14b   :  { %629 = vmatmul.mubr.bf16.vlgmr.msra.gmra.mrb[4].mxu0 %v1861_v21 }
 0x14c   :  { %1456 = vmatpush3.bf16.msra.mxu0 %v1689_v58 }
 0x14d   :  { %1457 = vmatprep.subr.bf16.mxu0 %v1690_v59 }
 0x150   :  { %1458 = vmatpush3.bf16.msra.mxu0 %v1691_v60  ;;  %v1685_v60 = vld [vmem:[#allocation5 + $0x1f0] ss:$8 sps:$4 sm:$0xff]  }
 0x151   :  { %1459 = vmatprep.subr.bf16.mxu0 %v1692_v61 }
 0x154   :  { %1460 = vmatpush3.bf16.msra.mxu0 %v1693_v62 }
 0x155   :  { %1461 = vmatprep.subr.bf16.mxu0 %v1694_v63 }
 0x158   :  { %1462 = vmatpush3.bf16.msra.mxu0 %v1695_v0 }
 0x159   :  { %1463 = vmatprep.subr.bf16.mxu0 %v1696_v2  ;;  %v1700_v2 = vld [vmem:[%s1944_s7 + $0x70] sm:$0xff]  }
 0x15c   :  { %1464 = vmatpush3.bf16.msra.mxu0 %v1697_v3  ;;  %v1701_v3 = vld [vmem:[%s1944_s7 + $0x30] sm:$0xff]  }
 0x15d   :  { %1465 = vmatprep.subr.bf16.mxu0 %v1698_v5  ;;  %v1702_v5 = vld [vmem:[%s1944_s7 + $0x78] sm:$0xff]  }
 0x160   :  { %1466 = vmatpush3.bf16.msra.mxu0 %v1699_v6  ;;  %v1703_v6 = vld [vmem:[%s1944_s7 + $0x38] sm:$0xff]  }
 0x161   :  { %1467 = vmatprep.subr.bf16.mxu0 %v1700_v2 }
 0x164   :  { %1468 = vmatpush3.bf16.msra.mxu0 %v1701_v3 }
 0x165   :  { %1469 = vmatprep.subr.bf16.mxu0 %v1702_v5 }
 0x168   :  { %1470 = vmatpush3.bf16.msra.mxu0 %v1703_v6 }
 0x1de   :  { %v589_v11 = vpop.f32.mrb[0].mxu0 }
 0x1df   :  { %v590_v12 = vadd.f32 %v589_v11, %v218_v9  ;;  %v591_v13 = vpop.f32.mrb[1].mxu0  ;;  %v714_v9 = vrot.slane %v709_v8, %v1851_v4 }
 0x1e0   :  { %v592_v14 = vadd.f32 %v591_v13, %v222_v10  ;;  %v593_v15 = vpop.f32.mrb[2].mxu0  ;;  %v718_v10 = vrot.slane %v709_v8, %v1857_v7 }
 0x1e1   :  { %v637_v16 = vmax.f32 %v590_v12, 0.0  ;;  %v594_v17 = vpop.f32.mrb[3].mxu0 }
 0x1e2   :  { %v638_v18 = vmax.f32 %v592_v14, 0.0 }
 0x1e3   :  { %v641_v21 = vpack.c.bf16 %v637_v16, %v637_v16 }
 0x1e4   :  { %v642_v19 = vpack.c.bf16 %v638_v18, %v638_v18 }
 0x1e6   :  { %1073 = vmatprep.mubr.bf16.mxu1 %v642_v19 }
 0x1e7   :  { %1074 = vmatmul.mubr.bf16.vlgmr.msra.gmra.mrb[4].mxu1 %v641_v21 }
 0x1e8   :  { %1083 = vmatpush1.bf16.msra.mxu1 %v1640_v20 }
 0x1e9   :  { %1084 = vmatprep.subr.bf16.mxu1 %v1645_v22  ;;  %v1160_v22 = vstv %s1945_s8 }
 0x1ec   :  { %1085 = vmatpush1.bf16.msra.mxu1 %v1643_v23 }
 0x1ed   :  { %1086 = vmatprep.subr.bf16.mxu1 %v1648_v24 }
 0x1f0   :  { %1087 = vmatpush1.bf16.msra.mxu1 %v1646_v25 }
 0x1f1   :  { %1088 = vmatprep.subr.bf16.mxu1 %v1651_v26 }
 0x1f4   :  { %1089 = vmatpush1.bf16.msra.mxu1 %v1649_v27 }
 0x1f5   :  { %1090 = vmatprep.subr.bf16.mxu1 %v1654_v28 }
 0x1f8   :  { %1091 = vmatpush1.bf16.msra.mxu1 %v1652_v29 }
 0x1f9   :  { %1092 = vmatprep.subr.bf16.mxu1 %v1657_v30 }
 0x1fc   :  { %1093 = vmatpush1.bf16.msra.mxu1 %v1655_v31 }
 0x1fd   :  { %1094 = vmatprep.subr.bf16.mxu1 %v1660_v32 }
 0x200   :  { %1095 = vmatpush1.bf16.msra.mxu1 %v1658_v33 }
 0x201   :  { %1096 = vmatprep.subr.bf16.mxu1 %v1663_v34 }
 0x204   :  { %1097 = vmatpush1.bf16.msra.mxu1 %v1661_v35 }
 0x205   :  { %1098 = vmatprep.subr.bf16.mxu1 %v1666_v36 }
 0x208   :  { %1099 = vmatpush1.bf16.msra.mxu1 %v1664_v37 }
 0x209   :  { %1100 = vmatprep.subr.bf16.mxu1 %v1669_v38 }
 0x20c   :  { %1101 = vmatpush1.bf16.msra.mxu1 %v1667_v39 }
 0x20d   :  { %1102 = vmatprep.subr.bf16.mxu1 %v1672_v40 }
 0x210   :  { %1103 = vmatpush1.bf16.msra.mxu1 %v1670_v41 }
 0x211   :  { %1104 = vmatprep.subr.bf16.mxu1 %v1675_v42 }
 0x214   :  { %1105 = vmatpush1.bf16.msra.mxu1 %v1673_v43 }
 0x215   :  { %1106 = vmatprep.subr.bf16.mxu1 %v1678_v44 }
 0x218   :  { %1107 = vmatpush1.bf16.msra.mxu1 %v1676_v45 }
 0x219   :  { %1108 = vmatprep.subr.bf16.mxu1 %v1681_v46 }
 0x21c   :  { %1109 = vmatpush1.bf16.msra.mxu1 %v1679_v48 }
 0x21d   :  { %1110 = vmatprep.subr.bf16.mxu1 %v1684_v50 }
 0x21e   :  { %v630_v55 = vpop.f32.mrb[4].mxu0 }
 0x21f   :  { %v631_v56 = vadd.f32 %v630_v55, %v226_v51  ;;  %v632_v57 = vpop.f32.mrb[5].mxu0 }
 0x220   :  { %v633_v58 = vadd.f32 %v632_v57, %v230_v52  ;;  %v634_v59 = vpop.f32.mrb[6].mxu0  ;;  %1111 = vmatpush1.bf16.msra.mxu1 %v1682_v53 }
 0x221   :  { %v639_v61 = vmax.f32 %v631_v56, 0.0  ;;  %v635_v62 = vpop.f32.mrb[7].mxu0  ;;  %1112 = vmatprep.subr.bf16.mxu1 %v1687_v54 }
 0x222   :  { %v640_v1 = vmax.f32 %v633_v58, 0.0 }
 0x223   :  { %v643_v0 = vpack.c.bf16 %v639_v61, %v639_v61 }
 0x224   :  { %v644_v63 = vpack.c.bf16 %v640_v1, %v640_v1  ;;  %1113 = vmatpush1.bf16.msra.mxu1 %v1685_v60 }
 0x226   :  { %1114 = vmatprep.mubr.bf16.mxu1 %v644_v63 }
 0x227   :  { %1115 = vmatmul.mubr.bf16.vlgmr.msra.gmra.mrb[4].mxu1 %v643_v0 }
 0x2fa   :  { %v1116_v11 = vpop.f32.mrb[4].mxu1 }
 0x2fb   :  { %v1477_v12 = vadd.f32 %v1116_v11, %v714_v9  ;;  %v1118_v13 = vpop.f32.mrb[5].mxu1 }
 0x2fc   :  { %v1478_v14 = vadd.f32 %v1118_v13, %v718_v10  ;;  %v1120_v15 = vpop.f32.mrb[6].mxu1 }
 0x2fd   :  { %v1123_v16 = vmax.f32 %v1477_v12, 0.0  ;;  %v1121_v17 = vpop.f32.mrb[7].mxu1 }
 0x2fe   :  { %v1124_v18 = vmax.f32 %v1478_v14, 0.0 }
 0x2ff   :  { %v1125_v20 = vpack.c.bf16 %v1123_v16, %v1123_v16 }
 0x300   :  { %v1126_v19 = vpack.c.bf16 %v1124_v18, %v1124_v18 }
 0x302   :  { %1289 = vmatprep.mubr.bf16.mxu0 %v1126_v19 }
 0x303   :  { %1290 = vmatmul.mubr.bf16.vlgmr.msra.gmra.mrb[8].mxu0 %v1125_v20 }
 0x3d6   :  { %v1471_v21 = vpop.f32.mrb[8].mxu0 }
 0x3d7   :  { %v1472_v4 = vpop.f32.mrb[9].mxu0 }
 0x3d8   :  { %v1473_v23 = vadd.f32 %v1472_v4, %v1471_v21  ;;  %v1474_v7 = vpop.f32.mrb[10].mxu0 }
 0x3d9   :  { %v1475_v24 = vpop.f32.mrb[11].mxu0 }
 0x3da   :  { %v1292_v25 = vadd.f32 %v1473_v23, %v1160_v22 }
 0x3dc   :  { %v1297_v26 = vmax.f32 %v1292_v25, 0.0 }
 0x3de   :  { %1299 = vst.msk [vmem:[%s1946_s9] sm:$0xff] %vm1298_vm1, %v1297_v26 }
 0x3df   :  { %1304 = vsyncpa [#allocation4], 1 }
 0x3e0   :  { %1305 = vsyncpa [#allocation6], 1 }

</bundles_post_ra>
